<compile_context>
chip_gen: v7x
topology: tpu7x:2x2x1
jax: 0.10.0
libtpu: 0.0.40
codegen_flags: <defaults>
</compile_context>

<pallas_src>
import math

import jax
import jax.numpy as jnp
from jax.experimental import pallas as pl
from jax.experimental.pallas import tpu as pltpu


def _kernel_scale_offset(x_ref, w_ref, b_ref, o_ref):
    o_ref[...] = (x_ref[...] * w_ref[...] + b_ref[...]).astype(o_ref.dtype)


def _kernel_scale(x_ref, w_ref, o_ref):
    o_ref[...] = (x_ref[...] * w_ref[...]).astype(o_ref.dtype)


def _kernel_offset(x_ref, b_ref, o_ref):
    o_ref[...] = (x_ref[...] + b_ref[...]).astype(o_ref.dtype)


def scale_offset(x, weight=None, bias=None):
    """ScaleOffset.forward: x * weight + bias broadcast over the last dim.

    weight=None corresponds to scale=False (skip multiply);
    bias=None corresponds to offset=False (skip add).
    """
    # ---- Identity fast path: no scale, no offset -> no HBM pass at all ----
    if weight is None and bias is None:
        return x

    orig_shape = x.shape
    hidden = orig_shape[-1]
    dtype = x.dtype
    itemsize = jnp.dtype(dtype).itemsize
    total = math.prod(orig_shape)
    rows = total // hidden

    # Pin params to the activation dtype so compute/store dtype is x.dtype.
    if weight is not None:
        weight = jnp.asarray(weight, dtype).reshape(-1)
    if bias is not None:
        bias = jnp.asarray(bias, dtype).reshape(-1)

    # ---- Lane-dense repack: make the kernel's last dim a multiple of 128 ----
    pad_cols = 0
    if hidden % 128 == 0:
        ncols = hidden
        tile_reps = 1
        x2d = x.reshape(rows, hidden)
    else:
        lcm = (hidden * 128) // math.gcd(hidden, 128)
        if total % lcm == 0:
            # View the flat array with an lcm-wide last dim; gamma/beta are
            # periodic in `hidden`, so tiling them lcm//hidden times matches exactly.
            ncols = lcm
            tile_reps = lcm // hidden
            x2d = x.reshape(total // lcm, lcm)
        else:
            # Pad the last dim to the next 128 multiple: stores stay lane-dense
            # (unmasked vst); padded columns are sliced off after the kernel.
            ncols = ((hidden + 127) // 128) * 128
            pad_cols = ncols - hidden
            tile_reps = 1
            x2d = jnp.pad(x.reshape(rows, hidden), ((0, 0), (0, pad_cols)))

    n_rows = x2d.shape[0]

    def _param_row(p, fill):
        if tile_reps > 1:
            p = jnp.tile(p, tile_reps)
        if pad_cols:
            p = jnp.concatenate([p, jnp.full((pad_cols,), fill, dtype)])
        return p.reshape(1, ncols)

    param_rows = []
    if weight is not None:
        param_rows.append(_param_row(weight, 1))
    if bias is not None:
        param_rows.append(_param_row(bias, 0))

    if weight is not None and bias is not None:
        kernel = _kernel_scale_offset
    elif weight is not None:
        kernel = _kernel_scale
    else:
        kernel = _kernel_offset

    # ---- Tiling ----
    sublane = max(8, 32 // itemsize)        # 8 (f32), 16 (bf16), 32 (int8/fp8)
    target_tile_bytes = 4 * 1024 * 1024     # ~4 MiB x tiles (good on v5e/v6e/v7x)

    # Columns: keep full width (one contiguous HBM DMA per tile) unless even a
    # minimum-height tile would exceed the budget.
    if sublane * ncols * itemsize > target_tile_bytes:
        block_cols = max(128, (target_tile_bytes // (sublane * itemsize)) // 128 * 128)
        grid_cols = pl.cdiv(ncols, block_cols)
    else:
        block_cols = ncols
        grid_cols = 1

    # Rows: ~target_tile_bytes per x tile, sublane-aligned; ragged last block is
    # handled by Pallas (OOB reads padded, OOB writes dropped).
    desired = max(sublane, (target_tile_bytes // (block_cols * itemsize)) // sublane * sublane)
    x_bytes = n_rows * ncols * itemsize
    if n_rows > desired:
        block_rows = desired
    elif x_bytes >= 2 * 1024 * 1024 and n_rows > sublane:
        # Guarantee >=2 steps on the parallel row axis so both v7x TensorCores
        # get work even when a single block would fit.
        half = -(-n_rows // 2)
        block_rows = ((half + sublane - 1) // sublane) * sublane
        if block_rows >= n_rows:
            block_rows = n_rows
    else:
        block_rows = n_rows
    grid_rows = pl.cdiv(n_rows, block_rows)

    x_spec = pl.BlockSpec((block_rows, block_cols), lambda j, i: (i, j))
    p_spec = pl.BlockSpec((1, block_cols), lambda j, i: (0, j))
    in_specs = [x_spec] + [p_spec] * len(param_rows)

    n_affine_ops = int(weight is not None) + int(bias is not None)
    cost = pl.CostEstimate(
        flops=n_affine_ops * total,
        transcendentals=0,
        bytes_accessed=2 * total * itemsize + sum(int(p.size) for p in param_rows) * itemsize,
    )

    out2d = pl.pallas_call(
        kernel,
        out_shape=jax.ShapeDtypeStruct((n_rows, ncols), dtype),
        grid_spec=pltpu.PrefetchScalarGridSpec(
            num_scalar_prefetch=0,
            # Column stripes are the OUTER axis: w/b block index is constant
            # across the inner row loop (no redundant param DMAs), and x/out
            # tiles stream HBM in address order.
            grid=(grid_cols, grid_rows),
            in_specs=in_specs,
            out_specs=pl.BlockSpec((block_rows, block_cols), lambda j, i: (i, j)),
        ),
        compiler_params=pltpu.CompilerParams(
            dimension_semantics=("parallel", "parallel"),
            # 4 MiB tiles, double-buffered x + out (~16 MiB) + tiny w/b rows;
            # 48 MiB is above the default scoped limit on every generation and
            # below physical VMEM on v7x (64 MiB/TC).
            vmem_limit_bytes=48 * 1024 * 1024,
        ),
        cost_estimate=cost,
    )(x2d, *param_rows)

    if pad_cols:
        out2d = out2d[:, :hidden]
    return out2d.reshape(orig_shape)


if __name__ == "__main__":
    key = jax.random.PRNGKey(0)
    batch, seq, hidden = 2, 8, 32
    k_x, k_w, k_b, k_x2, k_w2, k_b2 = jax.random.split(key, 6)

    # Parameters init like nn.Parameter(torch.ones/zeros(hidden)), perturbed so
    # the test exercises real scaling and offsetting.
    x = jax.random.normal(k_x, (batch, seq, hidden), dtype=jnp.float32)
    weight = 1.0 + 0.1 * jax.random.normal(k_w, (hidden,), dtype=jnp.float32)
    bias = 0.1 * jax.random.normal(k_b, (hidden,), dtype=jnp.float32)

    # scale=True, offset=True
    out = jax.block_until_ready(scale_offset(x, weight, bias))
    assert out.shape == x.shape
    assert jnp.allclose(out, x * weight + bias, atol=1e-6), "mismatch: scale+offset"

    # scale=True, offset=False
    out_s = jax.block_until_ready(scale_offset(x, weight, None))
    assert jnp.allclose(out_s, x * weight, atol=1e-6), "mismatch: scale only"

    # scale=False, offset=True
    out_o = jax.block_until_ready(scale_offset(x, None, bias))
    assert jnp.allclose(out_o, x + bias, atol=1e-6), "mismatch: offset only"

    # scale=False, offset=False -> identity fast path (no kernel launch)
    out_i = jax.block_until_ready(scale_offset(x, None, None))
    assert jnp.allclose(out_i, x), "mismatch: identity"

    # Lane-dense padding fallback (hidden not a 128 multiple, rows not lcm-aligned).
    x2 = jax.random.normal(k_x2, (1, 5, 48), dtype=jnp.float32)
    w2 = 1.0 + 0.1 * jax.random.normal(k_w2, (48,), dtype=jnp.float32)
    b2 = 0.1 * jax.random.normal(k_b2, (48,), dtype=jnp.float32)
    out2 = jax.block_until_ready(scale_offset(x2, w2, b2))
    assert jnp.allclose(out2, x2 * w2 + b2, atol=1e-6), "mismatch: padded fallback"

    print("KERNEL_OK")
</pallas_src>

<mosaic_0001>
module attributes {stable_mosaic.version = 11 : i64} {
  func.func @_kernel_scale_offset(%arg0: i32, %arg1: i32, %arg2: memref<4x128xf32, #tpu.memory_space<vmem>>, %arg3: memref<1x128xf32, #tpu.memory_space<vmem>>, %arg4: memref<1x128xf32, #tpu.memory_space<vmem>>, %arg5: memref<4x128xf32, #tpu.memory_space<vmem>>) attributes {dimension_semantics = [#tpu.dimension_semantics<parallel>, #tpu.dimension_semantics<parallel>], iteration_bounds = array<i64: 1, 1>, scalar_prefetch = 0 : i64, scratch_operands = 0 : i64, tpu.core_type = #tpu.core_type<tc>, window_params = [{transform_indices = @transform_0, window_bounds = array<i64: 4, 128>}, {transform_indices = @transform_1, window_bounds = array<i64: 1, 128>}, {transform_indices = @transform_2, window_bounds = array<i64: 1, 128>}, {transform_indices = @transform_3, window_bounds = array<i64: 4, 128>}]} {
    %c0 = arith.constant 0 : index
    %c0_0 = arith.constant 0 : index
    %0 = vector.load %arg2[%c0, %c0_0] : memref<4x128xf32, #tpu.memory_space<vmem>>, vector<4x128xf32>
    %c0_1 = arith.constant 0 : index
    %c0_2 = arith.constant 0 : index
    %1 = vector.load %arg3[%c0_1, %c0_2] : memref<1x128xf32, #tpu.memory_space<vmem>>, vector<1x128xf32>
    %2 = vector.broadcast %1 : vector<1x128xf32> to vector<4x128xf32>
    %3 = arith.mulf %0, %2 : vector<4x128xf32>
    %c0_3 = arith.constant 0 : index
    %c0_4 = arith.constant 0 : index
    %4 = vector.load %arg4[%c0_3, %c0_4] : memref<1x128xf32, #tpu.memory_space<vmem>>, vector<1x128xf32>
    %5 = vector.broadcast %4 : vector<1x128xf32> to vector<4x128xf32>
    %6 = arith.addf %3, %5 : vector<4x128xf32>
    %c0_5 = arith.constant 0 : index
    %c0_6 = arith.constant 0 : index
    %7 = vector.load %arg5[%c0_5, %c0_6] : memref<4x128xf32, #tpu.memory_space<vmem>>, vector<4x128xf32>
    tpu.vector_store %arg5[%c0_5, %c0_6], %6 {strides = array<i32>} : memref<4x128xf32, #tpu.memory_space<vmem>>, vector<4x128xf32>,
    return
  }
  func.func @transform_0(%arg0: i32, %arg1: i32) -> (i32, i32) {
    %c0_i32 = arith.constant 0 : i32
    return %arg1, %arg0 : i32, i32
  }
  func.func @transform_1(%arg0: i32, %arg1: i32) -> (i32, i32) {
    %c0_i32 = arith.constant 0 : i32
    %c0_i32_0 = arith.constant 0 : i32
    return %c0_i32, %arg0 : i32, i32
  }
  func.func @transform_2(%arg0: i32, %arg1: i32) -> (i32, i32) {
    %c0_i32 = arith.constant 0 : i32
    %c0_i32_0 = arith.constant 0 : i32
    return %c0_i32, %arg0 : i32, i32
  }
  func.func @transform_3(%arg0: i32, %arg1: i32) -> (i32, i32) {
    %c0_i32 = arith.constant 0 : i32
    return %arg1, %arg0 : i32, i32
  }
}

</mosaic_0001>

<bundles_post_ra>
// kernel: tpu_custom_call.1
= control target key start
LH: loop header
LB: loop body
LE: loop exit
PB: predicated region body
PF: predicated region fallthrough
CT: control target
= control target key end

     0   :  { %8 = vsyncpa [#allocation3], 0  ;;  %s164_s0 = inlined_call_operand.hbm [shape: f32[4,128], index: 0, kind: input, shape index: {}]   ;;  %s165_s1 = inlined_call_operand.vmem [shape: f32[1,128], index: 1, kind: input, shape index: {}]   ;;  %s166_s2 = inlined_call_operand.vmem [shape: f32[1,128], index: 2, kind: input, shape index: {}]   ;;  %s167_s3 = inlined_call_operand.hbm [shape: f32[4,128], index: 3, kind: output, shape index: {}]  }
   0x1   :  { %9 = vsyncpa [#allocation4], 0  ;;  %s112_s12 = smov [#allocation2]   ;;  %s64_s16 = scalar_lea.hbm %s164_s0, 64 }
   0x2   :  { %s16_s13 = sshll.u32 %s112_s12, 4  ;;  %p65_p0 = scmp.ne.s32.totalorder %s164_s0, %s64_s16  ;;  %s17_s13 = int_to_ptr.vmem [resolvable:$true] %s16_s13 }
   0x3   :  { %p68_p1 = scmp.lt.u32.totalorder %s64_s16, %s164_s0 }
   0x5   :  { %p70_p2 = pnand %p68_p1, %p65_p0 }
   0x7   :  { %73 = shalt.err (!%p70_p2)
}
   0x8   :  { %s74_s21 = scalar_lea.vmem %s17_s13, 64  ;;  %p79_p4 = scmp.lt.s32.totalorder %s17_s13, %s17_s13 }
   0x9   :  { %p75_p3 = scmp.ne.s32.totalorder %s17_s13, %s74_s21  ;;  %p80_p5 = scmp.lt.s32.totalorder %s74_s21, %s74_s21 }
   0xb   :  { %p81_p6 = por %p80_p5, %p79_p4 }
   0xd   :  { %p82_p7 = pnand %p81_p6, %p75_p3 }
   0xf   :  { %85 = shalt.err (!%p82_p7)
}
  0x10   :  { %19 = dma.hbm_to_vmem [thread:$0]  %s164_s0, 64, %s17_s13, [#allocation3]  }
  0x11   :  { %108 = dma.done.wait [#allocation3], 64  }
  0x12   :  { %109 = vsyncadd [#allocation3], 4294967232  ;;  %s113_s24 = smov [#allocation5]   ;;  %v27_v0 = vld [vmem:[#allocation2] sm:$0xf] }
  0x13   :  { %s51_s25 = sshll.u32 %s113_s24, 4  ;;  %v60_v1 = vld [vmem:[%s165_s1] ss:$0 sm:$0xff]  ;;  %s52_s25 = int_to_ptr.vmem [resolvable:$true] %s51_s25 }
  0x14   :  { %v61_v2 = vld [vmem:[%s166_s2] ss:$0 sm:$0xff]  ;;  %v35_v3 = vmul.f32 %v60_v1, %v27_v0  ;;  %s86_s30 = scalar_lea.vmem %s52_s25, 64  ;;  %p91_p9 = scmp.lt.s32.totalorder %s52_s25, %s52_s25 }
  0x15   :  { %p87_p8 = scmp.ne.s32.totalorder %s52_s25, %s86_s30  ;;  %p92_p10 = scmp.lt.s32.totalorder %s86_s30, %s86_s30 }
  0x16   :  { %v43_v4 = vadd.f32 %v61_v2, %v35_v3 }
  0x17   :  { %p93_p11 = por %p92_p10, %p91_p9 }
  0x18   :  { %44 = vst [vmem:[#allocation5] sm:$0xf] %v43_v4 }
  0x19   :  { %p94_p12 = pnand %p93_p11, %p87_p8 }
  0x1b   :  { %97 = shalt.err (!%p94_p12)
}
  0x1c   :  { %s98_s5 = scalar_lea.hbm %s167_s3, 64 }
  0x1d   :  { %p99_p13 = scmp.ne.s32.totalorder %s167_s3, %s98_s5  ;;  %p102_p0 = scmp.lt.u32.totalorder %s98_s5, %s167_s3 }
  0x1f   :  { %p104_p1 = pnand %p102_p0, %p99_p13 }
  0x21   :  { %107 = shalt.err (!%p104_p1)
}
  0x22   :  { %54 = dma.vmem_to_hbm [thread:$0]  %s52_s25, 64, %s167_s3, [#allocation4]  }
  0x23   :  { %110 = dma.done.wait [#allocation4], 64  }
  0x24   :  { %111 = vsyncadd [#allocation4], 4294967232 }
  0x25   :  { %58 = vsyncpa [#allocation3], 1 }
  0x26   :  { %59 = vsyncpa [#allocation4], 1 }

</bundles_post_ra>
